<compile_context>
chip_gen: v7x
topology: tpu7x:2x2x1
jax: 0.10.0
libtpu: 0.0.40
codegen_flags: <defaults>
</compile_context>

<pallas_src>
import functools
import math

import jax
import jax.numpy as jnp
from jax import lax
from jax.experimental import pallas as pl
from jax.experimental.pallas import tpu as pltpu


def make_pe_buffer(d_model: int, max_len: int, dtype=jnp.float32):
    """Sinusoidal `pe` buffer exactly like the PyTorch __init__ (host-side glue)."""
    position = jnp.arange(max_len, dtype=jnp.float32)[:, None]            # (L, 1)
    div_term = jnp.exp(
        jnp.arange(0, d_model, 2, dtype=jnp.float32) * (-math.log(10000.0) / d_model)
    )                                                                      # (D/2,)
    angles = position * div_term                                           # (L, D/2)
    pe = jnp.zeros((max_len, d_model), dtype=jnp.float32)
    pe = pe.at[:, 0::2].set(jnp.sin(angles))
    pe = pe.at[:, 1::2].set(jnp.cos(angles))
    # pe.unsqueeze(0).transpose(0, 1) -> (max_len, 1, d_model)
    return pe[:, None, :].astype(dtype)


# ----------------------------------------------------------------------------- kernel


def _pe_kernel(ratio_ref, seed_ref, x_ref, pe_ref, o_ref, *, mode, batch, p, training):
    """x + ratio*pe (+ inverted dropout). `mode` controls how pe broadcasts to x."""
    cdt = x_ref.dtype                                    # compute in x's dtype
    x = x_ref[...]
    pe = pe_ref[...].astype(cdt)
    if mode == "concat" and batch > 1:
        # (tS, D) -> (tS, B*D): row s of x.reshape(S, B*D) repeats pe[s] per batch.
        pe = jnp.concatenate([pe] * batch, axis=-1)
    # mode == "sublane": pe is (tS, 1, D) and broadcasts against x (tS, B, D) for free.
    # mode == "fullflat": pe already has x's block shape (pre-broadcast host-side).
    ratio = ratio_ref[0].astype(cdt)

    if not training:
        o_ref[...] = (x + ratio * pe).astype(o_ref.dtype)
        return

    # Inverted dropout: fold the 1/(1-p) scale into both scalars (scalar-unit cost).
    scale = jnp.asarray(1.0 / (1.0 - p), dtype=cdt)
    y = x * scale + (ratio * scale) * pe

    # Portable counter-based PRNG: murmur-style int32 mix of the global element
    # index XOR the user seed.  Pure VPU int ops -> works on TPU and interpret.
    shape = x.shape
    idx = lax.broadcasted_iota(jnp.int32, shape, 0)
    for d in range(1, len(shape)):
        idx = idx * shape[d] + lax.broadcasted_iota(jnp.int32, shape, d)
    numel = 1
    for s in shape:
        numel *= s
    idx = idx + pl.program_id(0) * numel                 # unique across grid blocks

    h = idx ^ seed_ref[0]
    h = h * jnp.int32(-2048144789)                       # 0x85EBCA6B
    h = h ^ (h >> 13)
    h = h * jnp.int32(-1028477387)                       # 0xC2B2AE35
    h = h ^ (h >> 16)
    r24 = h & jnp.int32(0x00FFFFFF)                      # uniform in [0, 2^24)
    keep = r24 >= jnp.int32(int(round(p * float(1 << 24))))   # P(drop) ~= p
    o_ref[...] = jnp.where(keep, y, jnp.zeros_like(y)).astype(o_ref.dtype)


# ----------------------------------------------------------------------------- sizing


def _vmem_plan():
    """(tile budget, scoped vmem limit) sized from the chip's physical VMEM."""
    cap = 64 << 20                       # assume the smallest generation (v7x) if unknown
    try:
        cap = int(pltpu.get_tpu_info().vmem_capacity_bytes)
    except Exception:
        pass
    tile_budget = max(8 << 20, (cap * 3) // 8)           # ~24 MiB on v7x, ~48 MiB v5e/v6e
    vmem_limit = min(cap - (16 << 20), tile_budget + (16 << 20))
    return tile_budget, int(vmem_limit)


def _choose_rows(n_rows, x_cols, pe_cols, itemsize, training, budget_bytes,
                 min_blocks=8):
    """Rows per block, budgeting the FULL per-block VMEM footprint."""
    row = 4 * x_cols * itemsize          # x + out tiles, double-buffered
    row += 2 * pe_cols * itemsize        # pe tile, double-buffered
    row += 2 * x_cols * itemsize         # y / broadcast-pe compute temporaries
    if training:
        row += 3 * x_cols * 4            # int32 iota / hash / mask temporaries
    t = budget_bytes // max(1, row)
    cap = -(-n_rows // min_blocks)       # keep >= min_blocks grid blocks (v7x, 2 TCs)...
    if cap * row >= (1 << 20):           # ...but never shrink below ~1 MiB of work/block
        t = min(t, cap)
    t = max(8, (t // 8) * 8)             # (8, 128) sublane-tiling constraint
    return min(n_rows, t)


# ----------------------------------------------------------------------------- wrapper


def positional_encoding(x, pe, pos_ratio=1.0, *, dropout_p=0.1,
                        training=False, seed=0, seq_tile=None):
    """x: (S, B, D); pe: (max_len, 1, D). Returns dropout(x + pos_ratio*pe[:S])."""
    S, B, D = x.shape
    if S > pe.shape[0]:
        raise ValueError(f"seq_len {S} exceeds pe max_len {pe.shape[0]}")
    use_dropout = bool(training) and float(dropout_p) > 0.0
    if use_dropout and not float(dropout_p) < 1.0:
        raise ValueError("dropout_p must be < 1.0 in training mode")

    dt = x.dtype
    itemsize = dt.itemsize
    ratio = jnp.asarray([pos_ratio], dtype=jnp.float32)        # f32 scalar in SMEM
    seed_arr = jnp.asarray([seed], dtype=jnp.int32)            # i32 scalar in SMEM
    budget, vmem_limit = _vmem_plan()

    # Layout selection: keep output stores lane-dense and the pe broadcast cheap.
    if B >= 8 and D % 128 == 0:
        mode = "sublane"            # 3-D blocks, free sublane broadcast of pe
    elif (B * D) % 128 == 0:
        mode = "concat"             # flattened (S, B*D), small-B lane concat of pe
    elif (S * B * D) % 128 == 0:
        mode = "fullflat"           # fully flattened lane-dense (rows, 128) view
    else:
        # TODO(synk): B*D not a multiple of 128 and total not flattenable to a
        # lane-dense view -> falls back to masked (partial-lane) stores.
        mode = "concat"

    if mode == "sublane":
        x_in = x                                                 # (S, B, D)
        pe_in = pe[:S].astype(dt)                                # (S, 1, D)
        n_rows, x_cols, pe_cols = S, B * D, D
        t = int(seq_tile) if seq_tile else _choose_rows(
            n_rows, x_cols, pe_cols, itemsize, use_dropout, budget)
        x_spec = pl.BlockSpec((t, B, D), lambda i: (i, 0, 0))
        pe_spec = pl.BlockSpec((t, 1, D), lambda i: (i, 0, 0))
        out_struct = jax.ShapeDtypeStruct((S, B, D), dt)
    elif mode == "concat":
        x_in = x.reshape(S, B * D)                               # lane-dense 2-D view
        pe_in = pe[:S, 0, :].astype(dt)                          # (S, D) in x.dtype
        n_rows, x_cols, pe_cols = S, B * D, D
        t = int(seq_tile) if seq_tile else _choose_rows(
            n_rows, x_cols, pe_cols, itemsize, use_dropout, budget)
        x_spec = pl.BlockSpec((t, B * D), lambda i: (i, 0))
        pe_spec = pl.BlockSpec((t, D), lambda i: (i, 0))
        out_struct = jax.ShapeDtypeStruct((S, B * D), dt)
    else:  # "fullflat": B*D < 128 -> pre-broadcast pe host-side (cheap at this size)
        lanes = 128
        n_rows = (S * B * D) // lanes
        x_in = x.reshape(n_rows, lanes)
        pe_in = jnp.broadcast_to(pe[:S].astype(dt), (S, B, D)).reshape(n_rows, lanes)
        x_cols = pe_cols = lanes
        t = int(seq_tile) if seq_tile else _choose_rows(
            n_rows, x_cols, pe_cols, itemsize, use_dropout, budget)
        x_spec = pl.BlockSpec((t, lanes), lambda i: (i, 0))
        pe_spec = pl.BlockSpec((t, lanes), lambda i: (i, 0))
        out_struct = jax.ShapeDtypeStruct((n_rows, lanes), dt)

    grid = (pl.cdiv(n_rows, t),)
    smem_spec = pl.BlockSpec(memory_space=pltpu.MemorySpace.SMEM)
    kernel = functools.partial(_pe_kernel, mode=mode, batch=B,
                               p=float(dropout_p), training=use_dropout)

    out = pl.pallas_call(
        kernel,
        out_shape=out_struct,
        grid=grid,
        in_specs=[smem_spec, smem_spec, x_spec, pe_spec],
        out_specs=x_spec,
        compiler_params=pltpu.CompilerParams(
            dimension_semantics=("parallel",),          # v7x: shard grid over both TCs
            vmem_limit_bytes=vmem_limit,                # sized with headroom per chip
        ),
    )(ratio, seed_arr, x_in, pe_in)

    return out.reshape(S, B, D)


# ----------------------------------------------------------------------------- demo


if __name__ == "__main__":
    key = jax.random.PRNGKey(0)

    def torch_ref(x, pe, ratio):
        return x + ratio * pe[: x.shape[0]]

    # Path 1: small demo shape (B*D = 64 < 128 -> fully-flattened lane-dense view)
    d_model, max_len, seq, batch = 32, 64, 8, 2
    k1, k2, k3 = jax.random.split(key, 3)
    x = jax.random.normal(k1, (seq, batch, d_model), dtype=jnp.float32)
    pe = make_pe_buffer(d_model, max_len)
    out = jax.block_until_ready(positional_encoding(x, pe, 1.0, training=False))
    ref = torch_ref(x, pe, 1.0)
    assert out.shape == x.shape and out.dtype == x.dtype
    assert jnp.allclose(out, ref, atol=1e-6, rtol=1e-6), "mismatch vs reference (fullflat)"

    # Path 2: flattened (S, B*D) view with in-kernel lane concat (small batch)
    x2 = jax.random.normal(k2, (16, 2, 128), dtype=jnp.float32)
    pe2 = make_pe_buffer(128, 32)
    out2 = jax.block_until_ready(positional_encoding(x2, pe2, 0.5, training=False))
    assert jnp.allclose(out2, torch_ref(x2, pe2, 0.5), atol=1e-6, rtol=1e-6), \
        "mismatch vs reference (concat)"

    # Path 3: 3-D blocks with free sublane pe broadcast (batch >= 8, D % 128 == 0)
    x3 = jax.random.normal(k3, (16, 8, 128), dtype=jnp.float32)
    out3 = jax.block_until_ready(positional_encoding(x3, pe2, 2.0, training=False))
    assert jnp.allclose(out3, torch_ref(x3, pe2, 2.0), atol=1e-6, rtol=1e-6), \
        "mismatch vs reference (sublane)"

    # Training path: inverted dropout (p=0.1) on the demo shape.
    p = 0.1
    out_tr = jax.block_until_ready(
        positional_encoding(x, pe, 1.0, dropout_p=p, training=True, seed=123))
    assert out_tr.shape == x.shape and out_tr.dtype == x.dtype
    scaled_ref = ref / (1.0 - p)
    kept = out_tr != 0.0
    # Every kept element equals ref/(1-p); dropped elements are exactly 0.
    assert jnp.allclose(jnp.where(kept, out_tr, scaled_ref), scaled_ref,
                        atol=1e-5, rtol=1e-5), "dropout kept values wrong"
    drop_frac = float(jnp.mean(1.0 - kept.astype(jnp.float32)))
    assert 0.0 < drop_frac < 0.35, f"dropout rate looks wrong: {drop_frac}"

    print("KERNEL_OK")
</pallas_src>

<mosaic_0001>
module attributes {stable_mosaic.version = 11 : i64} {
  func.func @_pe_kernel(%arg0: i32, %arg1: memref<1xf32, #tpu.memory_space<smem>>, %arg2: memref<1xi32, #tpu.memory_space<smem>>, %arg3: memref<4x128xf32, #tpu.memory_space<vmem>>, %arg4: memref<4x128xf32, #tpu.memory_space<vmem>>, %arg5: memref<4x128xf32, #tpu.memory_space<vmem>>) attributes {dimension_semantics = [#tpu.dimension_semantics<parallel>], iteration_bounds = array<i64: 1>, scalar_prefetch = 0 : i64, scratch_operands = 0 : i64, tpu.core_type = #tpu.core_type<tc>, window_params = [{transform_indices = @transform_0, window_bounds = array<i64: 1>}, {transform_indices = @transform_1, window_bounds = array<i64: 1>}, {transform_indices = @transform_2, window_bounds = array<i64: 4, 128>}, {transform_indices = @transform_3, window_bounds = array<i64: 4, 128>}, {transform_indices = @transform_4, window_bounds = array<i64: 4, 128>}]} {
    %c0 = arith.constant 0 : index
    %c0_0 = arith.constant 0 : index
    %0 = vector.load %arg3[%c0, %c0_0] : memref<4x128xf32, #tpu.memory_space<vmem>>, vector<4x128xf32>
    %c0_1 = arith.constant 0 : index
    %c0_2 = arith.constant 0 : index
    %1 = vector.load %arg4[%c0_1, %c0_2] : memref<4x128xf32, #tpu.memory_space<vmem>>, vector<4x128xf32>
    %c0_3 = arith.constant 0 : index
    %2 = memref.load %arg1[%c0_3] : memref<1xf32, #tpu.memory_space<smem>>
    %3 = vector.broadcast %2 : f32 to vector<4x128xf32>
    %4 = arith.mulf %3, %1 : vector<4x128xf32>
    %5 = arith.addf %0, %4 : vector<4x128xf32>
    %c0_4 = arith.constant 0 : index
    %c0_5 = arith.constant 0 : index
    %6 = vector.load %arg5[%c0_4, %c0_5] : memref<4x128xf32, #tpu.memory_space<vmem>>, vector<4x128xf32>
    tpu.vector_store %arg5[%c0_4, %c0_5], %5 {strides = array<i32>} : memref<4x128xf32, #tpu.memory_space<vmem>>, vector<4x128xf32>,
    return
  }
  func.func @transform_0(%arg0: i32) -> i32 {
    %c0_i32 = arith.constant 0 : i32
    %c0_i32_0 = arith.constant 0 : i32
    return %c0_i32 : i32
  }
  func.func @transform_1(%arg0: i32) -> i32 {
    %c0_i32 = arith.constant 0 : i32
    %c0_i32_0 = arith.constant 0 : i32
    return %c0_i32 : i32
  }
  func.func @transform_2(%arg0: i32) -> (i32, i32) {
    %c0_i32 = arith.constant 0 : i32
    %c0_i32_0 = arith.constant 0 : i32
    return %arg0, %c0_i32 : i32, i32
  }
  func.func @transform_3(%arg0: i32) -> (i32, i32) {
    %c0_i32 = arith.constant 0 : i32
    %c0_i32_0 = arith.constant 0 : i32
    return %arg0, %c0_i32 : i32, i32
  }
  func.func @transform_4(%arg0: i32) -> (i32, i32) {
    %c0_i32 = arith.constant 0 : i32
    %c0_i32_0 = arith.constant 0 : i32
    return %arg0, %c0_i32 : i32, i32
  }
}

</mosaic_0001>

<bundles_post_ra>
// kernel: tpu_custom_call.1
= control target key start
LH: loop header
LB: loop body
LE: loop exit
PB: predicated region body
PF: predicated region fallthrough
CT: control target
= control target key end

     0   :  { %s113_s0 = inlined_call_operand.<no memory space> [shape: f32[1], index: 0, kind: input, shape index: {}]   ;;  %s114_s1 = inlined_call_operand.<no memory space> [shape: s32[1], index: 1, kind: input, shape index: {}]   ;;  %s115_s2 = inlined_call_operand.vmem [shape: f32[4,128], index: 2, kind: input, shape index: {}]   ;;  %s116_s3 = inlined_call_operand.vmem [shape: f32[4,128], index: 3, kind: input, shape index: {}]   ;;  %s117_s4 = inlined_call_operand.hbm [shape: f32[4,128], index: 4, kind: output, shape index: {}]  }
   0x1   :  { %v20_v0 = vld [vmem:[%s115_s2] sm:$0xf]  ;;  %v23_v2 = vstv %s113_s0 }
   0x2   :  { %v21_v1 = vld [vmem:[%s116_s3] sm:$0xf] }
   0x3   :  { %11 = vsyncpa [#allocation5], 0  ;;  %v24_v3 = vmul.f32 %v23_v2, %v21_v1  ;;  %s66_s1 = smov [#allocation4]  }
   0x4   :  { %s33_s21 = sshll.u32 %s66_s1, 4  ;;  %s34_s21 = int_to_ptr.vmem [resolvable:$true] %s33_s21 }
   0x5   :  { %v25_v4 = vadd.f32 %v24_v3, %v20_v0  ;;  %s42_s22 = scalar_lea.vmem %s34_s21, 64  ;;  %p47_p1 = scmp.lt.s32.totalorder %s34_s21, %s34_s21 }
   0x6   :  { %p43_p0 = scmp.ne.s32.totalorder %s34_s21, %s42_s22  ;;  %p48_p2 = scmp.lt.s32.totalorder %s42_s22, %s42_s22 }
   0x7   :  { %26 = vst [vmem:[#allocation4] sm:$0xf] %v25_v4 }
   0x8   :  { %p49_p3 = por %p48_p2, %p47_p1 }
   0xa   :  { %p50_p4 = pnand %p49_p3, %p43_p0 }
   0xc   :  { %53 = shalt.err (!%p50_p4)
}
   0xd   :  { %s54_s23 = scalar_lea.hbm %s117_s4, 64 }
   0xe   :  { %p55_p5 = scmp.ne.s32.totalorder %s117_s4, %s54_s23  ;;  %p58_p6 = scmp.lt.u32.totalorder %s54_s23, %s117_s4 }
  0x10   :  { %p60_p7 = pnand %p58_p6, %p55_p5 }
  0x12   :  { %63 = shalt.err (!%p60_p7)
}
  0x13   :  { %36 = dma.vmem_to_hbm [thread:$0]  %s34_s21, 64, %s117_s4, [#allocation5]  }
  0x14   :  { %64 = dma.done.wait [#allocation5], 64  }
  0x15   :  { %65 = vsyncadd [#allocation5], 4294967232 }
  0x16   :  { %40 = vsyncpa [#allocation5], 1 }

</bundles_post_ra>
